<compile_context>
chip_gen: v5e
topology: v5e:2x2
jax: 0.10.0
libtpu: 0.0.40
codegen_flags: <defaults>
</compile_context>

<pallas_src>
import jax
import jax.numpy as jnp
from jax.experimental import pallas as pl
from jax.experimental.pallas import tpu as pltpu

B, S, D = 2, 8, 32          # batch, seq, d_model
H = 4                       # heads
DK = D // H                 # head dim
DFF = 64                    # feed-forward hidden
EPS = 1e-6


def _layernorm(x, gamma, beta):
    # annotated-transformer LayerNorm: unbiased std, eps added to std.
    mean = jnp.mean(x, axis=-1, keepdims=True)
    xc = x - mean
    var = jnp.sum(xc * xc, axis=-1, keepdims=True) * jnp.float32(1.0 / (D - 1))
    inv = pl.reciprocal(jnp.sqrt(var) + jnp.float32(EPS), approx=True)
    return gamma * xc * inv + beta


def encoder_layer_kernel(
    x_ref, dist_ref, mask_ref,
    ln1_g_ref, ln1_b_ref,
    wqkv_ref, bqkv_ref, wo_ref, bo_ref,
    ln2_g_ref, ln2_b_ref,
    w1_ref, b1_ref, w2_ref, b2_ref,
    o_ref,
):
    x = x_ref[...]                       # (B*S, D)

    # ---------- sublayer 0: x + self_attn(LN(x))  (dropout = identity) ------
    xn = _layernorm(x, ln1_g_ref[...], ln1_b_ref[...])

    # fused QKV projection: one MXU push instead of three
    qkv = jnp.dot(xn, wqkv_ref[...], preferred_element_type=jnp.float32) + bqkv_ref[...]
    q = qkv[:, 0 * D:1 * D]
    k = qkv[:, 1 * D:2 * D]
    v = qkv[:, 2 * D:3 * D]

    wo = wo_ref[...]
    scale = jnp.float32(1.0 / (DK ** 0.5))
    neg = jnp.float32(-1e9)

    attn_parts = []
    for b in range(B):                   # B = 2: small static loop over batch
        r0, r1 = b * S, (b + 1) * S
        # gather heads into a leading "batch" dim: (H, S, DK)
        qh = jnp.stack([q[r0:r1, h * DK:(h + 1) * DK] for h in range(H)], axis=0)
        kh = jnp.stack([k[r0:r1, h * DK:(h + 1) * DK] for h in range(H)], axis=0)
        vh = jnp.stack([v[r0:r1, h * DK:(h + 1) * DK] for h in range(H)], axis=0)

        s = jnp.einsum('hqd,hkd->hqk', qh, kh,
                       preferred_element_type=jnp.float32) * scale   # (H,S,S)
        # TODO(synk): exact molformer self_attn is an injected module; `dist`
        # is treated as an additive per-pair logit bias shared across heads.
        s = s + dist_ref[b]                                # (S,S) bcast over heads
        s = jnp.where(mask_ref[b] == 0.0, neg, s)          # (1,S) bcast over rows/heads
        s = s - jnp.max(s, axis=-1, keepdims=True)
        p = jnp.exp(s)
        p = p * pl.reciprocal(jnp.sum(p, axis=-1, keepdims=True), approx=True)
        ctx = jnp.einsum('hqk,hkd->hqd', p, vh,
                         preferred_element_type=jnp.float32)         # (H,S,DK)

        # recombine heads without a lane-dim concat:
        # attn_b = sum_h ctx[h] @ Wo[h*DK:(h+1)*DK, :]
        acc = jnp.dot(ctx[0], wo[0:DK, :], preferred_element_type=jnp.float32)
        for h in range(1, H):
            acc = acc + jnp.dot(ctx[h], wo[h * DK:(h + 1) * DK, :],
                                preferred_element_type=jnp.float32)
        attn_parts.append(acc)

    attn = jnp.concatenate(attn_parts, axis=0) + bo_ref[...]         # (B*S, D)
    x1 = x + attn

    # ---------- sublayer 1: x1 + feed_forward(LN(x1)) ------------------------
    xn2 = _layernorm(x1, ln2_g_ref[...], ln2_b_ref[...])
    h1 = jnp.dot(xn2, w1_ref[...], preferred_element_type=jnp.float32) + b1_ref[...]
    h1 = jnp.maximum(h1, 0.0)
    ff = jnp.dot(h1, w2_ref[...], preferred_element_type=jnp.float32) + b2_ref[...]
    o_ref[...] = x1 + ff


def encoder_layer(x, dist, mask, params):
    """x: (B,S,D) f32, dist: (B,S,S) f32, mask: (B,1,S) f32."""
    # fuse QKV weights/biases on the host (free, outside the kernel)
    wqkv = jnp.concatenate([params["wq"], params["wk"], params["wv"]], axis=1)  # (D,3D)
    bqkv = jnp.concatenate([params["bq"], params["bk"], params["bv"]], axis=1)  # (1,3D)

    args = [
        x.reshape(B * S, D), dist, mask,
        params["ln1_g"], params["ln1_b"],
        wqkv, bqkv, params["wo"], params["bo"],
        params["ln2_g"], params["ln2_b"],
        params["w1"], params["b1"], params["w2"], params["b2"],
    ]

    # single invocation, everything resident in VMEM (total << 1 MiB)
    out = pl.pallas_call(
        encoder_layer_kernel,
        out_shape=jax.ShapeDtypeStruct((B * S, D), jnp.float32),
        in_specs=[pl.BlockSpec(memory_space=pltpu.MemorySpace.VMEM) for _ in args],
        out_specs=pl.BlockSpec(memory_space=pltpu.MemorySpace.VMEM),
    )(*args)
    return out.reshape(B, S, D)


def make_params(key):
    ks = jax.random.split(key, 8)
    scale = 0.1
    params = {
        "ln1_g": jnp.ones((1, D), jnp.float32),
        "ln1_b": jnp.zeros((1, D), jnp.float32),
        "wq": scale * jax.random.normal(ks[0], (D, D), jnp.float32),
        "bq": jnp.zeros((1, D), jnp.float32),
        "wk": scale * jax.random.normal(ks[1], (D, D), jnp.float32),
        "bk": jnp.zeros((1, D), jnp.float32),
        "wv": scale * jax.random.normal(ks[2], (D, D), jnp.float32),
        "bv": jnp.zeros((1, D), jnp.float32),
        "wo": scale * jax.random.normal(ks[3], (D, D), jnp.float32),
        "bo": jnp.zeros((1, D), jnp.float32),
        "ln2_g": jnp.ones((1, D), jnp.float32),
        "ln2_b": jnp.zeros((1, D), jnp.float32),
        "w1": scale * jax.random.normal(ks[4], (D, DFF), jnp.float32),
        "b1": jnp.zeros((1, DFF), jnp.float32),
        "w2": scale * jax.random.normal(ks[5], (DFF, D), jnp.float32),
        "b2": jnp.zeros((1, D), jnp.float32),
    }
    return params


if __name__ == "__main__":
    key = jax.random.PRNGKey(0)
    kx, kd, kp = jax.random.split(key, 3)

    x = jax.random.normal(kx, (B, S, D), jnp.float32)
    # symmetric non-positive "distance"-like bias
    raw = jax.random.normal(kd, (B, S, S), jnp.float32)
    dist = -jnp.abs(raw + jnp.swapaxes(raw, -1, -2)) * 0.5
    # mask: keep everything except the last two positions of batch 1
    mask = jnp.ones((B, 1, S), jnp.float32)
    mask = mask.at[1, 0, -2:].set(0.0)

    params = make_params(kp)

    out = encoder_layer(x, dist, mask, params)
    out = jax.block_until_ready(out)
    assert out.shape == (B, S, D) and out.dtype == jnp.float32
    assert bool(jnp.all(jnp.isfinite(out)))
    print("KERNEL_OK")
</pallas_src>

<mosaic_0001>
module attributes {stable_mosaic.version = 11 : i64} {
  func.func @encoder_layer_kernel(%arg0: memref<16x32xf32, #tpu.memory_space<vmem>>, %arg1: memref<2x8x8xf32, #tpu.memory_space<vmem>>, %arg2: memref<2x1x8xf32, #tpu.memory_space<vmem>>, %arg3: memref<1x32xf32, #tpu.memory_space<vmem>>, %arg4: memref<1x32xf32, #tpu.memory_space<vmem>>, %arg5: memref<32x96xf32, #tpu.memory_space<vmem>>, %arg6: memref<1x96xf32, #tpu.memory_space<vmem>>, %arg7: memref<32x32xf32, #tpu.memory_space<vmem>>, %arg8: memref<1x32xf32, #tpu.memory_space<vmem>>, %arg9: memref<1x32xf32, #tpu.memory_space<vmem>>, %arg10: memref<1x32xf32, #tpu.memory_space<vmem>>, %arg11: memref<32x64xf32, #tpu.memory_space<vmem>>, %arg12: memref<1x64xf32, #tpu.memory_space<vmem>>, %arg13: memref<64x32xf32, #tpu.memory_space<vmem>>, %arg14: memref<1x32xf32, #tpu.memory_space<vmem>>, %arg15: memref<16x32xf32, #tpu.memory_space<vmem>>) attributes {dimension_semantics = [], scalar_prefetch = 0 : i64, scratch_operands = 0 : i64, tpu.core_type = #tpu.core_type<tc>} {
    %c0 = arith.constant 0 : index
    %c0_0 = arith.constant 0 : index
    %0 = vector.load %arg0[%c0, %c0_0] : memref<16x32xf32, #tpu.memory_space<vmem>>, vector<16x32xf32>
    %c0_1 = arith.constant 0 : index
    %c0_2 = arith.constant 0 : index
    %1 = vector.load %arg3[%c0_1, %c0_2] : memref<1x32xf32, #tpu.memory_space<vmem>>, vector<1x32xf32>
    %c0_3 = arith.constant 0 : index
    %c0_4 = arith.constant 0 : index
    %2 = vector.load %arg4[%c0_3, %c0_4] : memref<1x32xf32, #tpu.memory_space<vmem>>, vector<1x32xf32>
    %cst = arith.constant dense<0.000000e+00> : vector<16xf32>
    %3 = vector.multi_reduction <add>, %0, %cst [1] : vector<16x32xf32> to vector<16xf32>
    %4 = vector.shape_cast %3 : vector<16xf32> to vector<16x1xf32>
    %cst_5 = arith.constant 3.200000e+01 : f32
    %5 = vector.broadcast %cst_5 : f32 to vector<16x1xf32>
    %6 = arith.divf %4, %5 : vector<16x1xf32>
    %7 = vector.broadcast %6 : vector<16x1xf32> to vector<16x32xf32>
    %8 = arith.subf %0, %7 : vector<16x32xf32>
    %9 = arith.mulf %8, %8 : vector<16x32xf32>
    %cst_6 = arith.constant dense<0.000000e+00> : vector<16xf32>
    %10 = vector.multi_reduction <add>, %9, %cst_6 [1] : vector<16x32xf32> to vector<16xf32>
    %11 = vector.shape_cast %10 : vector<16xf32> to vector<16x1xf32>
    %cst_7 = arith.constant 0.0322580636 : f32
    %12 = vector.broadcast %cst_7 : f32 to vector<16x1xf32>
    %13 = arith.mulf %11, %12 : vector<16x1xf32>
    %14 = math.sqrt %13 : vector<16x1xf32>
    %cst_8 = arith.constant 9.99999997E-7 : f32
    %15 = vector.broadcast %cst_8 : f32 to vector<16x1xf32>
    %16 = arith.addf %14, %15 : vector<16x1xf32>
    %17 = tpu.reciprocal %16 {approx = true} : vector<16x1xf32> -> vector<16x1xf32>
    %18 = vector.broadcast %1 : vector<1x32xf32> to vector<16x32xf32>
    %19 = arith.mulf %18, %8 : vector<16x32xf32>
    %20 = vector.broadcast %17 : vector<16x1xf32> to vector<16x32xf32>
    %21 = arith.mulf %19, %20 : vector<16x32xf32>
    %22 = vector.broadcast %2 : vector<1x32xf32> to vector<16x32xf32>
    %23 = arith.addf %21, %22 : vector<16x32xf32>
    %c0_9 = arith.constant 0 : index
    %c0_10 = arith.constant 0 : index
    %24 = vector.load %arg5[%c0_9, %c0_10] : memref<32x96xf32, #tpu.memory_space<vmem>>, vector<32x96xf32>
    %cst_11 = arith.constant dense<0.000000e+00> : vector<16x96xf32>
    %25 = tpu.matmul %23, %24, %cst_11 {dimension_numbers = #tpu.dot_dimension_numbers<[1], [0], [0], [1], [0, 0, 1, 1], [], []>} : vector<16x32xf32>, vector<32x96xf32>, vector<16x96xf32> -> vector<16x96xf32>
    %c0_12 = arith.constant 0 : index
    %c0_13 = arith.constant 0 : index
    %26 = vector.load %arg6[%c0_12, %c0_13] : memref<1x96xf32, #tpu.memory_space<vmem>>, vector<1x96xf32>
    %27 = vector.broadcast %26 : vector<1x96xf32> to vector<16x96xf32>
    %28 = arith.addf %25, %27 : vector<16x96xf32>
    %29 = vector.extract_strided_slice %28 {offsets = [0, 0], sizes = [16, 32], strides = [1, 1]} : vector<16x96xf32> to vector<16x32xf32>
    %30 = vector.extract_strided_slice %28 {offsets = [0, 32], sizes = [16, 32], strides = [1, 1]} : vector<16x96xf32> to vector<16x32xf32>
    %31 = vector.extract_strided_slice %28 {offsets = [0, 64], sizes = [16, 32], strides = [1, 1]} : vector<16x96xf32> to vector<16x32xf32>
    %c0_14 = arith.constant 0 : index
    %c0_15 = arith.constant 0 : index
    %32 = vector.load %arg7[%c0_14, %c0_15] : memref<32x32xf32, #tpu.memory_space<vmem>>, vector<32x32xf32>
    %33 = vector.extract_strided_slice %29 {offsets = [0, 0], sizes = [8, 8], strides = [1, 1]} : vector<16x32xf32> to vector<8x8xf32>
    %34 = vector.extract_strided_slice %29 {offsets = [0, 8], sizes = [8, 8], strides = [1, 1]} : vector<16x32xf32> to vector<8x8xf32>
    %35 = vector.extract_strided_slice %29 {offsets = [0, 16], sizes = [8, 8], strides = [1, 1]} : vector<16x32xf32> to vector<8x8xf32>
    %36 = vector.extract_strided_slice %29 {offsets = [0, 24], sizes = [8, 8], strides = [1, 1]} : vector<16x32xf32> to vector<8x8xf32>
    %37 = vector.shape_cast %33 : vector<8x8xf32> to vector<1x8x8xf32>
    %38 = vector.shape_cast %34 : vector<8x8xf32> to vector<1x8x8xf32>
    %39 = vector.shape_cast %35 : vector<8x8xf32> to vector<1x8x8xf32>
    %40 = vector.shape_cast %36 : vector<8x8xf32> to vector<1x8x8xf32>
    %41 = tpu.concatenate %37, %38, %39, %40 in 0 : vector<1x8x8xf32>, vector<1x8x8xf32>, vector<1x8x8xf32>, vector<1x8x8xf32> -> vector<4x8x8xf32>
    %42 = vector.extract_strided_slice %30 {offsets = [0, 0], sizes = [8, 8], strides = [1, 1]} : vector<16x32xf32> to vector<8x8xf32>
    %43 = vector.extract_strided_slice %30 {offsets = [0, 8], sizes = [8, 8], strides = [1, 1]} : vector<16x32xf32> to vector<8x8xf32>
    %44 = vector.extract_strided_slice %30 {offsets = [0, 16], sizes = [8, 8], strides = [1, 1]} : vector<16x32xf32> to vector<8x8xf32>
    %45 = vector.extract_strided_slice %30 {offsets = [0, 24], sizes = [8, 8], strides = [1, 1]} : vector<16x32xf32> to vector<8x8xf32>
    %46 = vector.shape_cast %42 : vector<8x8xf32> to vector<1x8x8xf32>
    %47 = vector.shape_cast %43 : vector<8x8xf32> to vector<1x8x8xf32>
    %48 = vector.shape_cast %44 : vector<8x8xf32> to vector<1x8x8xf32>
    %49 = vector.shape_cast %45 : vector<8x8xf32> to vector<1x8x8xf32>
    %50 = tpu.concatenate %46, %47, %48, %49 in 0 : vector<1x8x8xf32>, vector<1x8x8xf32>, vector<1x8x8xf32>, vector<1x8x8xf32> -> vector<4x8x8xf32>
    %51 = vector.extract_strided_slice %31 {offsets = [0, 0], sizes = [8, 8], strides = [1, 1]} : vector<16x32xf32> to vector<8x8xf32>
    %52 = vector.extract_strided_slice %31 {offsets = [0, 8], sizes = [8, 8], strides = [1, 1]} : vector<16x32xf32> to vector<8x8xf32>
    %53 = vector.extract_strided_slice %31 {offsets = [0, 16], sizes = [8, 8], strides = [1, 1]} : vector<16x32xf32> to vector<8x8xf32>
    %54 = vector.extract_strided_slice %31 {offsets = [0, 24], sizes = [8, 8], strides = [1, 1]} : vector<16x32xf32> to vector<8x8xf32>
    %55 = vector.shape_cast %51 : vector<8x8xf32> to vector<1x8x8xf32>
    %56 = vector.shape_cast %52 : vector<8x8xf32> to vector<1x8x8xf32>
    %57 = vector.shape_cast %53 : vector<8x8xf32> to vector<1x8x8xf32>
    %58 = vector.shape_cast %54 : vector<8x8xf32> to vector<1x8x8xf32>
    %59 = tpu.concatenate %55, %56, %57, %58 in 0 : vector<1x8x8xf32>, vector<1x8x8xf32>, vector<1x8x8xf32>, vector<1x8x8xf32> -> vector<4x8x8xf32>
    "tpu.trace_start"() <{level = 10 : i32, message = "hqd,hkd->hqk"}> : () -> ()
    %cst_16 = arith.constant dense<0.000000e+00> : vector<4x8x8xf32>
    %60 = tpu.matmul %41, %50, %cst_16 {dimension_numbers = #tpu.dot_dimension_numbers<[2], [2], [1], [1], [0, 0, 0, 1, 1, 1], [0], [0]>} : vector<4x8x8xf32>, vector<4x8x8xf32>, vector<4x8x8xf32> -> vector<4x8x8xf32>
    "tpu.trace_stop"() : () -> ()
    %cst_17 = arith.constant 0.353553385 : f32
    %61 = vector.broadcast %cst_17 : f32 to vector<4x8x8xf32>
    %62 = arith.mulf %60, %61 : vector<4x8x8xf32>
    %c0_18 = arith.constant 0 : index
    %c0_19 = arith.constant 0 : index
    %c0_20 = arith.constant 0 : index
    %63 = vector.load %arg1[%c0_18, %c0_19, %c0_20] : memref<2x8x8xf32, #tpu.memory_space<vmem>>, vector<1x8x8xf32>
    %64 = vector.shape_cast %63 : vector<1x8x8xf32> to vector<8x8xf32>
    %65 = vector.shape_cast %64 : vector<8x8xf32> to vector<1x8x8xf32>
    %66 = vector.broadcast %65 : vector<1x8x8xf32> to vector<4x8x8xf32>
    %67 = arith.addf %62, %66 : vector<4x8x8xf32>
    %c0_21 = arith.constant 0 : index
    %c0_22 = arith.constant 0 : index
    %c0_23 = arith.constant 0 : index
    %68 = vector.load %arg2[%c0_21, %c0_22, %c0_23] : memref<2x1x8xf32, #tpu.memory_space<vmem>>, vector<1x1x8xf32>
    %69 = vector.shape_cast %68 : vector<1x1x8xf32> to vector<1x8xf32>
    %cst_24 = arith.constant 0.000000e+00 : f32
    %70 = vector.broadcast %cst_24 : f32 to vector<1x8xf32>
    %71 = arith.cmpf oeq, %69, %70 : vector<1x8xf32>
    %cst_25 = arith.constant -1.000000e+09 : f32
    %72 = vector.shape_cast %71 : vector<1x8xi1> to vector<1x1x8xi1>
    %73 = vector.broadcast %72 : vector<1x1x8xi1> to vector<4x8x8xi1>
    %74 = vector.broadcast %cst_25 : f32 to vector<4x8x8xf32>
    %75 = arith.select %73, %74, %67 : vector<4x8x8xi1>, vector<4x8x8xf32>
    %cst_26 = arith.constant dense<0xFF800000> : vector<4x8xf32>
    %76 = vector.multi_reduction <maximumf>, %75, %cst_26 [2] : vector<4x8x8xf32> to vector<4x8xf32>
    %77 = vector.shape_cast %76 : vector<4x8xf32> to vector<4x8x1xf32>
    %78 = vector.broadcast %77 : vector<4x8x1xf32> to vector<4x8x8xf32>
    %79 = arith.subf %75, %78 : vector<4x8x8xf32>
    %80 = math.exp %79 : vector<4x8x8xf32>
    %cst_27 = arith.constant dense<0.000000e+00> : vector<4x8xf32>
    %81 = vector.multi_reduction <add>, %80, %cst_27 [2] : vector<4x8x8xf32> to vector<4x8xf32>
    %82 = vector.shape_cast %81 : vector<4x8xf32> to vector<4x8x1xf32>
    %83 = tpu.reciprocal %82 {approx = true} : vector<4x8x1xf32> -> vector<4x8x1xf32>
    %84 = vector.broadcast %83 : vector<4x8x1xf32> to vector<4x8x8xf32>
    %85 = arith.mulf %80, %84 : vector<4x8x8xf32>
    "tpu.trace_start"() <{level = 10 : i32, message = "hqk,hkd->hqd"}> : () -> ()
    %cst_28 = arith.constant dense<0.000000e+00> : vector<4x8x8xf32>
    %86 = tpu.matmul %85, %59, %cst_28 {dimension_numbers = #tpu.dot_dimension_numbers<[2], [1], [1], [2], [0, 0, 0, 1, 1, 2], [0], [0]>} : vector<4x8x8xf32>, vector<4x8x8xf32>, vector<4x8x8xf32> -> vector<4x8x8xf32>
    "tpu.trace_stop"() : () -> ()
    %87 = vector.extract_strided_slice %86 {offsets = [0, 0, 0], sizes = [1, 8, 8], strides = [1, 1, 1]} : vector<4x8x8xf32> to vector<1x8x8xf32>
    %88 = vector.shape_cast %87 : vector<1x8x8xf32> to vector<8x8xf32>
    %89 = vector.extract_strided_slice %32 {offsets = [0, 0], sizes = [8, 32], strides = [1, 1]} : vector<32x32xf32> to vector<8x32xf32>
    %cst_29 = arith.constant dense<0.000000e+00> : vector<8x32xf32>
    %90 = tpu.matmul %88, %89, %cst_29 {dimension_numbers = #tpu.dot_dimension_numbers<[1], [0], [0], [1], [0, 0, 1, 1], [], []>} : vector<8x8xf32>, vector<8x32xf32>, vector<8x32xf32> -> vector<8x32xf32>
    %91 = vector.extract_strided_slice %86 {offsets = [1, 0, 0], sizes = [1, 8, 8], strides = [1, 1, 1]} : vector<4x8x8xf32> to vector<1x8x8xf32>
    %92 = vector.shape_cast %91 : vector<1x8x8xf32> to vector<8x8xf32>
    %93 = vector.extract_strided_slice %32 {offsets = [8, 0], sizes = [8, 32], strides = [1, 1]} : vector<32x32xf32> to vector<8x32xf32>
    %cst_30 = arith.constant dense<0.000000e+00> : vector<8x32xf32>
    %94 = tpu.matmul %92, %93, %cst_30 {dimension_numbers = #tpu.dot_dimension_numbers<[1], [0], [0], [1], [0, 0, 1, 1], [], []>} : vector<8x8xf32>, vector<8x32xf32>, vector<8x32xf32> -> vector<8x32xf32>
    %95 = arith.addf %90, %94 : vector<8x32xf32>
    %96 = vector.extract_strided_slice %86 {offsets = [2, 0, 0], sizes = [1, 8, 8], strides = [1, 1, 1]} : vector<4x8x8xf32> to vector<1x8x8xf32>
    %97 = vector.shape_cast %96 : vector<1x8x8xf32> to vector<8x8xf32>
    %98 = vector.extract_strided_slice %32 {offsets = [16, 0], sizes = [8, 32], strides = [1, 1]} : vector<32x32xf32> to vector<8x32xf32>
    %cst_31 = arith.constant dense<0.000000e+00> : vector<8x32xf32>
    %99 = tpu.matmul %97, %98, %cst_31 {dimension_numbers = #tpu.dot_dimension_numbers<[1], [0], [0], [1], [0, 0, 1, 1], [], []>} : vector<8x8xf32>, vector<8x32xf32>, vector<8x32xf32> -> vector<8x32xf32>
    %100 = arith.addf %95, %99 : vector<8x32xf32>
    %101 = vector.extract_strided_slice %86 {offsets = [3, 0, 0], sizes = [1, 8, 8], strides = [1, 1, 1]} : vector<4x8x8xf32> to vector<1x8x8xf32>
    %102 = vector.shape_cast %101 : vector<1x8x8xf32> to vector<8x8xf32>
    %103 = vector.extract_strided_slice %32 {offsets = [24, 0], sizes = [8, 32], strides = [1, 1]} : vector<32x32xf32> to vector<8x32xf32>
    %cst_32 = arith.constant dense<0.000000e+00> : vector<8x32xf32>
    %104 = tpu.matmul %102, %103, %cst_32 {dimension_numbers = #tpu.dot_dimension_numbers<[1], [0], [0], [1], [0, 0, 1, 1], [], []>} : vector<8x8xf32>, vector<8x32xf32>, vector<8x32xf32> -> vector<8x32xf32>
    %105 = arith.addf %100, %104 : vector<8x32xf32>
    %106 = vector.extract_strided_slice %29 {offsets = [8, 0], sizes = [8, 8], strides = [1, 1]} : vector<16x32xf32> to vector<8x8xf32>
    %107 = vector.extract_strided_slice %29 {offsets = [8, 8], sizes = [8, 8], strides = [1, 1]} : vector<16x32xf32> to vector<8x8xf32>
    %108 = vector.extract_strided_slice %29 {offsets = [8, 16], sizes = [8, 8], strides = [1, 1]} : vector<16x32xf32> to vector<8x8xf32>
    %109 = vector.extract_strided_slice %29 {offsets = [8, 24], sizes = [8, 8], strides = [1, 1]} : vector<16x32xf32> to vector<8x8xf32>
    %110 = vector.shape_cast %106 : vector<8x8xf32> to vector<1x8x8xf32>
    %111 = vector.shape_cast %107 : vector<8x8xf32> to vector<1x8x8xf32>
    %112 = vector.shape_cast %108 : vector<8x8xf32> to vector<1x8x8xf32>
    %113 = vector.shape_cast %109 : vector<8x8xf32> to vector<1x8x8xf32>
    %114 = tpu.concatenate %110, %111, %112, %113 in 0 : vector<1x8x8xf32>, vector<1x8x8xf32>, vector<1x8x8xf32>, vector<1x8x8xf32> -> vector<4x8x8xf32>
    %115 = vector.extract_strided_slice %30 {offsets = [8, 0], sizes = [8, 8], strides = [1, 1]} : vector<16x32xf32> to vector<8x8xf32>
    %116 = vector.extract_strided_slice %30 {offsets = [8, 8], sizes = [8, 8], strides = [1, 1]} : vector<16x32xf32> to vector<8x8xf32>
    %117 = vector.extract_strided_slice %30 {offsets = [8, 16], sizes = [8, 8], strides = [1, 1]} : vector<16x32xf32> to vector<8x8xf32>
    %118 = vector.extract_strided_slice %30 {offsets = [8, 24], sizes = [8, 8], strides = [1, 1]} : vector<16x32xf32> to vector<8x8xf32>
    %119 = vector.shape_cast %115 : vector<8x8xf32> to vector<1x8x8xf32>
    %120 = vector.shape_cast %116 : vector<8x8xf32> to vector<1x8x8xf32>
    %121 = vector.shape_cast %117 : vector<8x8xf32> to vector<1x8x8xf32>
    %122 = vector.shape_cast %118 : vector<8x8xf32> to vector<1x8x8xf32>
    %123 = tpu.concatenate %119, %120, %121, %122 in 0 : vector<1x8x8xf32>, vector<1x8x8xf32>, vector<1x8x8xf32>, vector<1x8x8xf32> -> vector<4x8x8xf32>
    %124 = vector.extract_strided_slice %31 {offsets = [8, 0], sizes = [8, 8], strides = [1, 1]} : vector<16x32xf32> to vector<8x8xf32>
    %125 = vector.extract_strided_slice %31 {offsets = [8, 8], sizes = [8, 8], strides = [1, 1]} : vector<16x32xf32> to vector<8x8xf32>
    %126 = vector.extract_strided_slice %31 {offsets = [8, 16], sizes = [8, 8], strides = [1, 1]} : vector<16x32xf32> to vector<8x8xf32>
    %127 = vector.extract_strided_slice %31 {offsets = [8, 24], sizes = [8, 8], strides = [1, 1]} : vector<16x32xf32> to vector<8x8xf32>
    %128 = vector.shape_cast %124 : vector<8x8xf32> to vector<1x8x8xf32>
    %129 = vector.shape_cast %125 : vector<8x8xf32> to vector<1x8x8xf32>
    %130 = vector.shape_cast %126 : vector<8x8xf32> to vector<1x8x8xf32>
    %131 = vector.shape_cast %127 : vector<8x8xf32> to vector<1x8x8xf32>
    %132 = tpu.concatenate %128, %129, %130, %131 in 0 : vector<1x8x8xf32>, vector<1x8x8xf32>, vector<1x8x8xf32>, vector<1x8x8xf32> -> vector<4x8x8xf32>
    "tpu.trace_start"() <{level = 10 : i32, message = "hqd,hkd->hqk"}> : () -> ()
    %cst_33 = arith.constant dense<0.000000e+00> : vector<4x8x8xf32>
    %133 = tpu.matmul %114, %123, %cst_33 {dimension_numbers = #tpu.dot_dimension_numbers<[2], [2], [1], [1], [0, 0, 0, 1, 1, 1], [0], [0]>} : vector<4x8x8xf32>, vector<4x8x8xf32>, vector<4x8x8xf32> -> vector<4x8x8xf32>
    "tpu.trace_stop"() : () -> ()
    %cst_34 = arith.constant 0.353553385 : f32
    %134 = vector.broadcast %cst_34 : f32 to vector<4x8x8xf32>
    %135 = arith.mulf %133, %134 : vector<4x8x8xf32>
    %c1 = arith.constant 1 : index
    %c0_35 = arith.constant 0 : index
    %c0_36 = arith.constant 0 : index
    %136 = vector.load %arg1[%c1, %c0_35, %c0_36] : memref<2x8x8xf32, #tpu.memory_space<vmem>>, vector<1x8x8xf32>
    %137 = vector.shape_cast %136 : vector<1x8x8xf32> to vector<8x8xf32>
    %138 = vector.shape_cast %137 : vector<8x8xf32> to vector<1x8x8xf32>
    %139 = vector.broadcast %138 : vector<1x8x8xf32> to vector<4x8x8xf32>
    %140 = arith.addf %135, %139 : vector<4x8x8xf32>
    %c1_37 = arith.constant 1 : index
    %c0_38 = arith.constant 0 : index
    %c0_39 = arith.constant 0 : index
    %141 = vector.load %arg2[%c1_37, %c0_38, %c0_39] : memref<2x1x8xf32, #tpu.memory_space<vmem>>, vector<1x1x8xf32>
    %142 = vector.shape_cast %141 : vector<1x1x8xf32> to vector<1x8xf32>
    %cst_40 = arith.constant 0.000000e+00 : f32
    %143 = vector.broadcast %cst_40 : f32 to vector<1x8xf32>
    %144 = arith.cmpf oeq, %142, %143 : vector<1x8xf32>
    %cst_41 = arith.constant -1.000000e+09 : f32
    %145 = vector.shape_cast %144 : vector<1x8xi1> to vector<1x1x8xi1>
    %146 = vector.broadcast %145 : vector<1x1x8xi1> to vector<4x8x8xi1>
    %147 = vector.broadcast %cst_41 : f32 to vector<4x8x8xf32>
    %148 = arith.select %146, %147, %140 : vector<4x8x8xi1>, vector<4x8x8xf32>
    %cst_42 = arith.constant dense<0xFF800000> : vector<4x8xf32>
    %149 = vector.multi_reduction <maximumf>, %148, %cst_42 [2] : vector<4x8x8xf32> to vector<4x8xf32>
    %150 = vector.shape_cast %149 : vector<4x8xf32> to vector<4x8x1xf32>
    %151 = vector.broadcast %150 : vector<4x8x1xf32> to vector<4x8x8xf32>
    %152 = arith.subf %148, %151 : vector<4x8x8xf32>
    %153 = math.exp %152 : vector<4x8x8xf32>
    %cst_43 = arith.constant dense<0.000000e+00> : vector<4x8xf32>
    %154 = vector.multi_reduction <add>, %153, %cst_43 [2] : vector<4x8x8xf32> to vector<4x8xf32>
    %155 = vector.shape_cast %154 : vector<4x8xf32> to vector<4x8x1xf32>
    %156 = tpu.reciprocal %155 {approx = true} : vector<4x8x1xf32> -> vector<4x8x1xf32>
    %157 = vector.broadcast %156 : vector<4x8x1xf32> to vector<4x8x8xf32>
    %158 = arith.mulf %153, %157 : vector<4x8x8xf32>
    "tpu.trace_start"() <{level = 10 : i32, message = "hqk,hkd->hqd"}> : () -> ()
    %cst_44 = arith.constant dense<0.000000e+00> : vector<4x8x8xf32>
    %159 = tpu.matmul %158, %132, %cst_44 {dimension_numbers = #tpu.dot_dimension_numbers<[2], [1], [1], [2], [0, 0, 0, 1, 1, 2], [0], [0]>} : vector<4x8x8xf32>, vector<4x8x8xf32>, vector<4x8x8xf32> -> vector<4x8x8xf32>
    "tpu.trace_stop"() : () -> ()
    %160 = vector.extract_strided_slice %159 {offsets = [0, 0, 0], sizes = [1, 8, 8], strides = [1, 1, 1]} : vector<4x8x8xf32> to vector<1x8x8xf32>
    %161 = vector.shape_cast %160 : vector<1x8x8xf32> to vector<8x8xf32>
    %162 = vector.extract_strided_slice %32 {offsets = [0, 0], sizes = [8, 32], strides = [1, 1]} : vector<32x32xf32> to vector<8x32xf32>
    %cst_45 = arith.constant dense<0.000000e+00> : vector<8x32xf32>
    %163 = tpu.matmul %161, %162, %cst_45 {dimension_numbers = #tpu.dot_dimension_numbers<[1], [0], [0], [1], [0, 0, 1, 1], [], []>} : vector<8x8xf32>, vector<8x32xf32>, vector<8x32xf32> -> vector<8x32xf32>
    %164 = vector.extract_strided_slice %159 {offsets = [1, 0, 0], sizes = [1, 8, 8], strides = [1, 1, 1]} : vector<4x8x8xf32> to vector<1x8x8xf32>
    %165 = vector.shape_cast %164 : vector<1x8x8xf32> to vector<8x8xf32>
    %166 = vector.extract_strided_slice %32 {offsets = [8, 0], sizes = [8, 32], strides = [1, 1]} : vector<32x32xf32> to vector<8x32xf32>
    %cst_46 = arith.constant dense<0.000000e+00> : vector<8x32xf32>
    %167 = tpu.matmul %165, %166, %cst_46 {dimension_numbers = #tpu.dot_dimension_numbers<[1], [0], [0], [1], [0, 0, 1, 1], [], []>} : vector<8x8xf32>, vector<8x32xf32>, vector<8x32xf32> -> vector<8x32xf32>
    %168 = arith.addf %163, %167 : vector<8x32xf32>
    %169 = vector.extract_strided_slice %159 {offsets = [2, 0, 0], sizes = [1, 8, 8], strides = [1, 1, 1]} : vector<4x8x8xf32> to vector<1x8x8xf32>
    %170 = vector.shape_cast %169 : vector<1x8x8xf32> to vector<8x8xf32>
    %171 = vector.extract_strided_slice %32 {offsets = [16, 0], sizes = [8, 32], strides = [1, 1]} : vector<32x32xf32> to vector<8x32xf32>
    %cst_47 = arith.constant dense<0.000000e+00> : vector<8x32xf32>
    %172 = tpu.matmul %170, %171, %cst_47 {dimension_numbers = #tpu.dot_dimension_numbers<[1], [0], [0], [1], [0, 0, 1, 1], [], []>} : vector<8x8xf32>, vector<8x32xf32>, vector<8x32xf32> -> vector<8x32xf32>
    %173 = arith.addf %168, %172 : vector<8x32xf32>
    %174 = vector.extract_strided_slice %159 {offsets = [3, 0, 0], sizes = [1, 8, 8], strides = [1, 1, 1]} : vector<4x8x8xf32> to vector<1x8x8xf32>
    %175 = vector.shape_cast %174 : vector<1x8x8xf32> to vector<8x8xf32>
    %176 = vector.extract_strided_slice %32 {offsets = [24, 0], sizes = [8, 32], strides = [1, 1]} : vector<32x32xf32> to vector<8x32xf32>
    %cst_48 = arith.constant dense<0.000000e+00> : vector<8x32xf32>
    %177 = tpu.matmul %175, %176, %cst_48 {dimension_numbers = #tpu.dot_dimension_numbers<[1], [0], [0], [1], [0, 0, 1, 1], [], []>} : vector<8x8xf32>, vector<8x32xf32>, vector<8x32xf32> -> vector<8x32xf32>
    %178 = arith.addf %173, %177 : vector<8x32xf32>
    %179 = tpu.concatenate %105, %178 in 0 : vector<8x32xf32>, vector<8x32xf32> -> vector<16x32xf32>
    %c0_49 = arith.constant 0 : index
    %c0_50 = arith.constant 0 : index
    %180 = vector.load %arg8[%c0_49, %c0_50] : memref<1x32xf32, #tpu.memory_space<vmem>>, vector<1x32xf32>
    %181 = vector.broadcast %180 : vector<1x32xf32> to vector<16x32xf32>
    %182 = arith.addf %179, %181 : vector<16x32xf32>
    %183 = arith.addf %0, %182 : vector<16x32xf32>
    %c0_51 = arith.constant 0 : index
    %c0_52 = arith.constant 0 : index
    %184 = vector.load %arg9[%c0_51, %c0_52] : memref<1x32xf32, #tpu.memory_space<vmem>>, vector<1x32xf32>
    %c0_53 = arith.constant 0 : index
    %c0_54 = arith.constant 0 : index
    %185 = vector.load %arg10[%c0_53, %c0_54] : memref<1x32xf32, #tpu.memory_space<vmem>>, vector<1x32xf32>
    %cst_55 = arith.constant dense<0.000000e+00> : vector<16xf32>
    %186 = vector.multi_reduction <add>, %183, %cst_55 [1] : vector<16x32xf32> to vector<16xf32>
    %187 = vector.shape_cast %186 : vector<16xf32> to vector<16x1xf32>
    %cst_56 = arith.constant 3.200000e+01 : f32
    %188 = vector.broadcast %cst_56 : f32 to vector<16x1xf32>
    %189 = arith.divf %187, %188 : vector<16x1xf32>
    %190 = vector.broadcast %189 : vector<16x1xf32> to vector<16x32xf32>
    %191 = arith.subf %183, %190 : vector<16x32xf32>
    %192 = arith.mulf %191, %191 : vector<16x32xf32>
    %cst_57 = arith.constant dense<0.000000e+00> : vector<16xf32>
    %193 = vector.multi_reduction <add>, %192, %cst_57 [1] : vector<16x32xf32> to vector<16xf32>
    %194 = vector.shape_cast %193 : vector<16xf32> to vector<16x1xf32>
    %cst_58 = arith.constant 0.0322580636 : f32
    %195 = vector.broadcast %cst_58 : f32 to vector<16x1xf32>
    %196 = arith.mulf %194, %195 : vector<16x1xf32>
    %197 = math.sqrt %196 : vector<16x1xf32>
    %cst_59 = arith.constant 9.99999997E-7 : f32
    %198 = vector.broadcast %cst_59 : f32 to vector<16x1xf32>
    %199 = arith.addf %197, %198 : vector<16x1xf32>
    %200 = tpu.reciprocal %199 {approx = true} : vector<16x1xf32> -> vector<16x1xf32>
    %201 = vector.broadcast %184 : vector<1x32xf32> to vector<16x32xf32>
    %202 = arith.mulf %201, %191 : vector<16x32xf32>
    %203 = vector.broadcast %200 : vector<16x1xf32> to vector<16x32xf32>
    %204 = arith.mulf %202, %203 : vector<16x32xf32>
    %205 = vector.broadcast %185 : vector<1x32xf32> to vector<16x32xf32>
    %206 = arith.addf %204, %205 : vector<16x32xf32>
    %c0_60 = arith.constant 0 : index
    %c0_61 = arith.constant 0 : index
    %207 = vector.load %arg11[%c0_60, %c0_61] : memref<32x64xf32, #tpu.memory_space<vmem>>, vector<32x64xf32>
    %cst_62 = arith.constant dense<0.000000e+00> : vector<16x64xf32>
    %208 = tpu.matmul %206, %207, %cst_62 {dimension_numbers = #tpu.dot_dimension_numbers<[1], [0], [0], [1], [0, 0, 1, 1], [], []>} : vector<16x32xf32>, vector<32x64xf32>, vector<16x64xf32> -> vector<16x64xf32>
    %c0_63 = arith.constant 0 : index
    %c0_64 = arith.constant 0 : index
    %209 = vector.load %arg12[%c0_63, %c0_64] : memref<1x64xf32, #tpu.memory_space<vmem>>, vector<1x64xf32>
    %210 = vector.broadcast %209 : vector<1x64xf32> to vector<16x64xf32>
    %211 = arith.addf %208, %210 : vector<16x64xf32>
    %cst_65 = arith.constant 0.000000e+00 : f32
    %212 = vector.broadcast %cst_65 : f32 to vector<16x64xf32>
    %213 = arith.maximumf %211, %212 : vector<16x64xf32>
    %c0_66 = arith.constant 0 : index
    %c0_67 = arith.constant 0 : index
    %214 = vector.load %arg13[%c0_66, %c0_67] : memref<64x32xf32, #tpu.memory_space<vmem>>, vector<64x32xf32>
    %cst_68 = arith.constant dense<0.000000e+00> : vector<16x32xf32>
    %215 = tpu.matmul %213, %214, %cst_68 {dimension_numbers = #tpu.dot_dimension_numbers<[1], [0], [0], [1], [0, 0, 1, 1], [], []>} : vector<16x64xf32>, vector<64x32xf32>, vector<16x32xf32> -> vector<16x32xf32>
    %c0_69 = arith.constant 0 : index
    %c0_70 = arith.constant 0 : index
    %216 = vector.load %arg14[%c0_69, %c0_70] : memref<1x32xf32, #tpu.memory_space<vmem>>, vector<1x32xf32>
    %217 = vector.broadcast %216 : vector<1x32xf32> to vector<16x32xf32>
    %218 = arith.addf %215, %217 : vector<16x32xf32>
    %219 = arith.addf %183, %218 : vector<16x32xf32>
    %c0_71 = arith.constant 0 : index
    %c0_72 = arith.constant 0 : index
    %220 = vector.load %arg15[%c0_71, %c0_72] : memref<16x32xf32, #tpu.memory_space<vmem>>, vector<16x32xf32>
    tpu.vector_store %arg15[%c0_71, %c0_72], %219 {strides = array<i32>} : memref<16x32xf32, #tpu.memory_space<vmem>>, vector<16x32xf32>,
    return
  }
}

</mosaic_0001>

<bundles_post_ra>
// kernel: tpu_custom_call.1
= control target key start
LH: loop header
LB: loop body
LE: loop exit
PB: predicated region body
PF: predicated region fallthrough
CT: control target
= control target key end

     0   :  { %20 = vsyncpa [#allocation3], 0  ;;  %s1762_s0 = inlined_call_operand.hbm [shape: f32[16,32], index: 0, kind: input, shape index: {}]   ;;  %s1763_s1 = inlined_call_operand.hbm [shape: f32[2,8,8], index: 1, kind: input, shape index: {}]   ;;  %s1764_s2 = inlined_call_operand.hbm [shape: f32[2,1,8], index: 2, kind: input, shape index: {}]   ;;  %s1765_s3 = inlined_call_operand.vmem [shape: f32[1,32], index: 3, kind: input, shape index: {}]   ;;  %s1766_s4 = inlined_call_operand.vmem [shape: f32[1,32], index: 4, kind: input, shape index: {}]   ;;  %s1767_s5 = inlined_call_operand.vmem [shape: f32[32,96], index: 5, kind: input, shape index: {}]   ;;  %s1768_s6 = inlined_call_operand.vmem [shape: f32[1,96], index: 6, kind: input, shape index: {}]   ;;  %s1769_s7 = inlined_call_operand.vmem [shape: f32[32,32], index: 7, kind: input, shape index: {}]   ;;  %s1770_s8 = inlined_call_operand.vmem [shape: f32[1,32], index: 8, kind: input, shape index: {}]   ;;  %s1771_s9 = inlined_call_operand.vmem [shape: f32[1,32], index: 9, kind: input, shape index: {}]   ;;  %s1772_s10 = inlined_call_operand.vmem [shape: f32[1,32], index: 10, kind: input, shape index: {}]   ;;  %s1773_s11 = inlined_call_operand.vmem [shape: f32[32,64], index: 11, kind: input, shape index: {}]   ;;  %s1774_s12 = inlined_call_operand.vmem [shape: f32[1,64], index: 12, kind: input, shape index: {}]   ;;  %s1775_s13 = inlined_call_operand.vmem [shape: f32[64,32], index: 13, kind: input, shape index: {}]   ;;  %s1776_s14 = inlined_call_operand.vmem [shape: f32[1,32], index: 14, kind: input, shape index: {}]   ;;  %s1777_s15 = inlined_call_operand.hbm [shape: f32[16,32], index: 15, kind: output, shape index: {}]  }
   0x1   :  { %21 = vsyncpa [#allocation6], 0 }
   0x2   :  { %22 = vsyncpa [#allocation4], 0  ;;  %s40_s20 = sshll.u32 %s1763_s1, 4  ;;  %s1358_s21 = smov [#allocation5]   ;;  %s41_s20 = int_to_ptr.hbm [resolvable:$true] %s40_s20 }
   0x3   :  { %s42_s22 = sshll.u32 %s1358_s21, 4  ;;  %s27_s25 = sshll.u32 %s1762_s0, 4  ;;  %s43_s22 = int_to_ptr.vmem [resolvable:$true] %s42_s22  ;;  %s28_s25 = int_to_ptr.hbm [resolvable:$true] %s27_s25 }
   0x4   :  { %s1359_s26 = smov 128   ;;  %s1360_s27 = smov 8  }
   0x5   :  { %48 = dma.hbm_to_vmem [thread:$0]  %s41_s20, 256, %s43_s22, [#allocation6], %s1359_s26, %s1359_s26, %s1360_s27  }
   0x6   :  { %s1361_s28 = smov [#allocation2]   ;;  %s53_s1 = sshll.u32 %s1764_s2, 4  ;;  %s54_s1 = int_to_ptr.hbm [resolvable:$true] %s53_s1 }
   0x7   :  { %s29_s29 = sshll.u32 %s1361_s28, 4  ;;  %s1362_s0 = smov [#allocation7]   ;;  %s30_s29 = int_to_ptr.vmem [resolvable:$true] %s29_s29 }
   0x8   :  { %35 = dma.hbm_to_vmem [thread:$0]  %s28_s25, 256, %s30_s29, [#allocation3], %s1359_s26, %s1359_s26, %s1360_s27  }
   0x9   :  { %s55_s17 = sshll.u32 %s1362_s0, 4  ;;  %s1363_s18 = smov 16   ;;  %s56_s17 = int_to_ptr.vmem [resolvable:$true] %s55_s17 }
   0xa   :  { %s1364_s19 = smov 1  }
   0xb   :  { %61 = dma.hbm_to_vmem [thread:$0]  %s54_s1, 32, %s56_s17, [#allocation6], %s1363_s18, %s1363_s18, %s1364_s19  }
   0xc   :  { %1352 = dma.done.wait [#allocation3], 256  }
   0xd   :  { %1353 = vsyncadd [#allocation3], 4294967040 }
   0xe   :  { %1354 = dma.done.wait [#allocation6], 288  }
   0xf   :  { %1355 = vsyncadd [#allocation6], 4294967008  ;;  %vm102_vm0 = vcmask 261120   ;;  %v1468_v0 = vld [vmem:[#allocation2] sm:$0xff]  ;;  %v1365_v2 = vmov 32.0   ;;  %v1472_v3 = vld [vmem:[#allocation2 + $0x8] sm:$0xff] }
  0x10   :  { %v103_v1 = vsel %vm102_vm0, %v1468_v0, 0.0  ;;  %1206 = vrcp.f32 %v1365_v2  ;;  %v106_v4 = vsel %vm102_vm0, %v1472_v3, 0.0  ;;  %v173_v16 = vld [vmem:[%s1767_s5 + $0x18] sm:$0xff]  ;;  %v172_v17 = vld [vmem:[%s1767_s5 + $0x10] sm:$0xff]  ;;  %v171_v18 = vld [vmem:[%s1767_s5 + $0x8] sm:$0xff]  ;;  %s1366_s1 = smov 96  }
  0x11   :  { %104 = vadd.xlane.f32.xlu0 %v103_v1  ;;  %107 = vadd.xlane.f32.xlu1 %v106_v4  ;;  %v170_v19 = vld [vmem:[%s1767_s5] sm:$0xff]  ;;  %s1367_s0 = smov 112   ;;  %s1368_s17 = smov 120   ;;  %vm220_vm6 = vcmask 64512   ;;  %vm1077_vm13 = vcmask 523264  }
  0x12   :  { %196 = vmatpush.msra.mxu0 %v173_v16  ;;  %1169 = vmatpush.msra.mxu1 %v173_v16  ;;  %v1198_v38 = vld [vmem:[%s1765_s3] ss:$0 sm:$0xff]  ;;  %v327_v16 = vld [vmem:[#allocation5] sm:$0xff]  ;;  %s1371_s18 = smov 64  }
  0x13   :  { %v1199_v40 = vld [vmem:[%s1766_s4] ss:$0 sm:$0xff] }
  0x14   :  { %197 = vmatpush.msra.mxu0 %v172_v17  ;;  %1170 = vmatpush.msra.mxu1 %v172_v17  ;;  %v1506_v59 = vld [vmem:[%s1768_s6] ss:$0 sm:$0xff]  ;;  %s1369_s6 = smov 104  }
  0x16   :  { %v1207_v5 = vpop.eup %1206  ;;  %198 = vmatpush.msra.mxu0 %v171_v18  ;;  %1171 = vmatpush.msra.mxu1 %v171_v18 }
  0x17   :  { %v110_v6 = vmul.f32 32.0, %v1207_v5  ;;  %vm114_vm1 = vweird.f32 %v1207_v5 }
  0x18   :  { %199 = vmatpush.msra.mxu0 %v170_v19  ;;  %1172 = vmatpush.msra.mxu1 %v170_v19 }
  0x19   :  { %v111_v7 = vsub.f32 1.0, %v110_v6 }
  0x1b   :  { %v112_v8 = vmul.f32 %v1207_v5, %v111_v7 }
  0x1d   :  { %v113_v9 = vadd.f32 %v1207_v5, %v112_v8 }
  0x1f   :  { %v1476_v10 = vsel %vm114_vm1, %v1207_v5, %v113_v9  ;;  %v332_v9 = vld [vmem:[#allocation7] sm:$0x1] }
  0x20   :  { %vm333_vm7 = vcmp.eq.f32.partialorder %v332_v9, 0.0  ;;  %v1590_v9 = vld [vmem:[%s1769_s7] sm:$0xff] }
  0x84   :  { %v105_v11 = vpop.xlane.xlu0 %104  ;;  %v108_v20 = vpop.xlane.xlu1 %107 }
  0x85   :  { %v116_v12 = vmul.f32 %v1476_v10, %v105_v11  ;;  %v117_v21 = vmul.f32 %v1476_v10, %v108_v20 }
  0x87   :  { %v118_v13 = vsub.f32 %v1468_v0, %v116_v12  ;;  %v119_v24 = vsub.f32 %v1472_v3, %v117_v21  ;;  %v1370_v12 = vmov 0  }
  0x89   :  { %v120_v14 = vmul.f32 %v118_v13, %v118_v13  ;;  %v121_v25 = vmul.f32 %v119_v24, %v119_v24  ;;  %v161_v39 = vmul.f32 %v1198_v38, %v118_v13  ;;  %v162_v57 = vmul.f32 %v1198_v38, %v119_v24 }
  0x8a   :  { %v334_v13 = vsel %vm333_vm7, 1, %v1370_v12 }
  0x8b   :  { %v122_v15 = vsel %vm102_vm0, %v120_v14, 0.0  ;;  %v125_v26 = vsel %vm102_vm0, %v121_v25, 0.0  ;;  %v335_v14 = vperm.slane %v334_v13, 0 }
  0x8c   :  { %123 = vadd.xlane.f32.xlu0 %v122_v15  ;;  %126 = vadd.xlane.f32.xlu1 %v125_v26 }
  0x8d   :  { %vm1541_vm8 = vcmp.eq.s32.totalorder %v335_v14, 1 }
  0xff   :  { %v124_v22 = vpop.xlane.xlu0 %123  ;;  %v127_v44 = vpop.xlane.xlu1 %126 }
 0x100   :  { %v128_v23 = vmul.f32 0.032258064, %v124_v22  ;;  %v129_v45 = vmul.f32 0.032258064, %v127_v44 }
 0x102   :  { %1208 = vrsqrt.f32 %v128_v23  ;;  %vm137_vm2 = vcmp.eq.f32.partialorder %v128_v23, inf  ;;  %v140_v34 = vand.u32 2147483648, %v128_v23  ;;  %vm139_vm3 = vcmp.eq.f32.partialorder %v128_v23, 0.0 }
 0x103   :  { %vm149_vm4 = vcmp.eq.f32.partialorder %v129_v45, inf  ;;  %v152_v52 = vand.u32 2147483648, %v129_v45  ;;  %vm151_vm5 = vcmp.eq.f32.partialorder %v129_v45, 0.0 }
 0x108   :  { %v1209_v27 = vpop.eup %1208 }
 0x109   :  { %v131_v28 = vmul.f32 %v1209_v27, %v128_v23 }
 0x10b   :  { %v132_v29 = vmul.f32 %v1209_v27, %v131_v28 }
 0x10d   :  { %v133_v30 = vmul.f32 0.5, %v132_v29 }
 0x10f   :  { %v134_v31 = vsub.f32 1.5, %v133_v30 }
 0x111   :  { %v135_v32 = vmul.f32 %v1209_v27, %v134_v31 }
 0x113   :  { %v136_v33 = vmul.f32 %v135_v32, %v128_v23 }
 0x115   :  { %v138_v35 = vsel %vm137_vm2, %v128_v23, %v136_v33 }
 0x116   :  { %v141_v36 = vsel %vm139_vm3, %v140_v34, %v138_v35 }
 0x117   :  { %v154_v37 = vadd.f32 1e-06, %v141_v36 }
 0x119   :  { %1210 = vrcp.f32 %v154_v37 }
 0x11a   :  { %1212 = vrsqrt.f32 %v129_v45 }
 0x11f   :  { %v1211_v41 = vpop.eup %1210 }
 0x120   :  { %v163_v42 = vmul.f32 %v1211_v41, %v161_v39  ;;  %v1213_v46 = vpop.eup %1212 }
 0x121   :  { %v143_v47 = vmul.f32 %v1213_v46, %v129_v45 }
 0x122   :  { %v168_v43 = vadd.f32 %v1199_v40, %v163_v42 }
 0x123   :  { %v144_v48 = vmul.f32 %v1213_v46, %v143_v47 }
 0x124   :  { %1131 = vmatmul.msk.f32.vlgmr.msra.gmra.mxu0 %vm102_vm0, %v168_v43 }
 0x125   :  { %v145_v49 = vmul.f32 0.5, %v144_v48 }
 0x127   :  { %v146_v50 = vsub.f32 1.5, %v145_v49 }
 0x129   :  { %v147_v51 = vmul.f32 %v1213_v46, %v146_v50 }
 0x12b   :  { %v148_v53 = vmul.f32 %v147_v51, %v129_v45 }
 0x12d   :  { %v150_v54 = vsel %vm149_vm4, %v129_v45, %v148_v53 }
 0x12e   :  { %v153_v55 = vsel %vm151_vm5, %v152_v52, %v150_v54 }
 0x12f   :  { %v155_v56 = vadd.f32 1e-06, %v153_v55 }
 0x131   :  { %1214 = vrcp.f32 %v155_v56 }
 0x137   :  { %v1215_v58 = vpop.eup %1214 }
 0x138   :  { %v164_v60 = vmul.f32 %v1215_v58, %v162_v57 }
 0x13a   :  { %v169_v62 = vadd.f32 %v1199_v40, %v164_v60 }
 0x13c   :  { %1132 = vmatmul.msk.f32.vlgmr.msra.gmra.mxu1 %vm102_vm0, %v169_v62 }
 0x1a1   :  { %v201_v61 = vpop.f32.mrf.mxu0 }
 0x1a2   :  { %v1509_v63 = vadd.f32 %v1506_v59, %v201_v61 }
 0x1a4   :  { %218 = vrot.lane.b32.xlu1 %v1509_v63, %s1366_s1  ;;  %214 = vrot.lane.b32.xlu0 %v1509_v63, %s1367_s0 }
 0x1a5   :  { %212 = vrot.lane.b32.xlu2 %v1509_v63, %s1368_s17 }
 0x1ad   :  { %216 = vrot.lane.b32.xlu2 %v1509_v63, %s1369_s6 }
 0x1b9   :  { %v204_v11 = vpop.f32.mrf.mxu1 }
 0x1ba   :  { %v1560_v41 = vadd.f32 %v1506_v59, %v204_v11 }
 0x1ff   :  { %v1520_v1 = vpop.permute.xlu2 %212 }
 0x200   :  { %245 = vrot.lane.b32.xlu2 %v1520_v1, %s1366_s1 }
 0x207   :  { %v217_v2 = vpop.permute.xlu2 %216 }
 0x208   :  { %297 = vrot.lane.b32.xlu2 %v217_v2, %s1366_s1  ;;  %v1188_v37 = vpack.i.bf16 %v217_v2, %v1509_v63 }
 0x216   :  { %v219_v4 = vpop.permute.xlu1 %218  ;;  %v1525_v5 = vpop.permute.xlu0 %214 }
 0x217   :  { %1133 = vmatpush.xpose.msk.msrb.mxu1 %vm220_vm6, %v219_v4  ;;  %271 = vrot.lane.b32.xlu2 %v1525_v5, %s1366_s1 }
 0x21a   :  { %1134 = vmatmul.msk.f32.vlgmr.msrb.gmra.mxu1 %vm220_vm6, %v1509_v63 }
 0x25a   :  { %v246_v6 = vpop.permute.xlu2 %245 }
 0x25b   :  { %1135 = vmatpush.xpose.msk.msra.mxu2 %vm220_vm6, %v246_v6 }
 0x25e   :  { %1136 = vmatmul.msk.f32.vlgmr.msra.gmra.mxu2 %vm220_vm6, %v1520_v1 }
 0x262   :  { %v298_v7 = vpop.permute.xlu2 %297 }
 0x263   :  { %1139 = vmatpush.xpose.msk.msra.mxu1 %vm220_vm6, %v298_v7 }
 0x266   :  { %1140 = vmatmul.msk.f32.vlgmr.msra.gmra.mxu1 %vm220_vm6, %v217_v2 }
 0x271   :  { %v272_v8 = vpop.permute.xlu2 %271 }
 0x272   :  { %1137 = vmatpush.xpose.msk.msra.mxu3 %vm220_vm6, %v272_v8 }
 0x275   :  { %1138 = vmatmul.msk.f32.vlgmr.msra.gmra.mxu3 %vm220_vm6, %v1525_v5 }
 0x297   :  { %v242_v15 = vpop.f32.mrf.mxu1 }
 0x298   :  { %v323_v17 = vmul.f32 0.35355338, %v242_v15 }
 0x29a   :  { %v328_v19 = vadd.f32 %v327_v16, %v323_v17 }
 0x29c   :  { %v337_v20 = vsel %vm1541_vm8, -1e+09, %v328_v19 }
 0x29d   :  { %v341_v21 = vsel %vm220_vm6, %v337_v20, -inf }
 0x29e   :  { %342 = vmax.xlane.f32.xlu0 %v341_v21  ;;  %v1609_v21 = vld [vmem:[%s1769_s7 + $0x18] sm:$0xff] }
 0x2e1   :  { %v268_v22 = vpop.f32.mrf.mxu2 }
 0x2e2   :  { %v324_v23 = vmul.f32 0.35355338, %v268_v22 }
 0x2e3   :  { %v320_v24 = vpop.f32.mrf.mxu1 }
 0x2e4   :  { %v329_v25 = vadd.f32 %v327_v16, %v324_v23  ;;  %v326_v26 = vmul.f32 0.35355338, %v320_v24 }
 0x2e6   :  { %v331_v27 = vadd.f32 %v327_v16, %v326_v26  ;;  %v338_v28 = vsel %vm1541_vm8, -1e+09, %v329_v25  ;;  %v1621_v26 = vld [vmem:[%s1769_s7 + $0x10] sm:$0xff] }
 0x2e7   :  { %v344_v29 = vsel %vm220_vm6, %v338_v28, -inf }
 0x2e8   :  { %345 = vmax.xlane.f32.xlu1 %v344_v29  ;;  %v340_v30 = vsel %vm1541_vm8, -1e+09, %v331_v27  ;;  %v705_v29 = vld [vmem:[#allocation7 + $0x1] sm:$0x1] }
 0x2e9   :  { %v350_v31 = vsel %vm220_vm6, %v340_v30, -inf  ;;  %vm706_vm9 = vcmp.eq.f32.partialorder %v705_v29, 0.0 }
 0x2ea   :  { %351 = vmax.xlane.f32.xlu2 %v350_v31 }
 0x2f8   :  { %v294_v32 = vpop.f32.mrf.mxu3 }
 0x2f9   :  { %v325_v33 = vmul.f32 0.35355338, %v294_v32  ;;  %v707_v32 = vsel %vm706_vm9, 1, %v1370_v12 }
 0x2fb   :  { %v330_v34 = vadd.f32 %v327_v16, %v325_v33  ;;  %v1597_v16 = vld [vmem:[%s1769_s7 + $0x8] sm:$0xff]  ;;  %v708_v33 = vperm.slane %v707_v32, 0 }
 0x2fd   :  { %v339_v35 = vsel %vm1541_vm8, -1e+09, %v330_v34  ;;  %vm1635_vm10 = vcmp.eq.s32.totalorder %v708_v33, 1 }
 0x2fe   :  { %v347_v36 = vsel %vm220_vm6, %v339_v35, -inf }
 0x2ff   :  { %348 = vmax.xlane.f32.xlu0 %v347_v36 }
 0x311   :  { %v343_v38 = vpop.xlane.xlu0 %342 }
 0x312   :  { %v353_v39 = vsub.f32 %v337_v20, %v343_v38 }
 0x313   :  { %1189 = vrot.lane.b32.xlu0 %v1188_v37, %s1371_s18 }
 0x314   :  { %v357_v40 = vmul.f32 1.442695, %v353_v39 }
 0x316   :  { %1216 = vpow2.f32 %v357_v40 }
 0x31b   :  { %588 = vrot.lane.b32.xlu0 %v1560_v41, %s1369_s6 }
 0x31c   :  { %v1217_v42 = vpop.eup %1216 }
 0x31d   :  { %v365_v43 = vsel %vm220_vm6, %v1217_v42, 0.0 }
 0x31e   :  { %366 = vadd.xlane.f32.xlu2 %v365_v43 }
 0x323   :  { %584 = vrot.lane.b32.xlu0 %v1560_v41, %s1368_s17 }
 0x35b   :  { %v346_v44 = vpop.xlane.xlu1 %345 }
 0x35c   :  { %v354_v45 = vsub.f32 %v338_v28, %v346_v44 }
 0x35d   :  { %v352_v46 = vpop.xlane.xlu2 %351 }
 0x35e   :  { %v359_v47 = vmul.f32 1.442695, %v354_v45  ;;  %v356_v48 = vsub.f32 %v340_v30, %v352_v46 }
 0x360   :  { %1218 = vpow2.f32 %v359_v47  ;;  %v363_v49 = vmul.f32 1.442695, %v356_v48 }
 0x362   :  { %1220 = vpow2.f32 %v363_v49 }
 0x366   :  { %v1219_v50 = vpop.eup %1218 }
 0x367   :  { %v368_v51 = vsel %vm220_vm6, %v1219_v50, 0.0 }
 0x368   :  { %v1221_v52 = vpop.eup %1220  ;;  %369 = vadd.xlane.f32.xlu2 %v368_v51 }
 0x369   :  { %v374_v53 = vsel %vm220_vm6, %v1221_v52, 0.0 }
 0x36a   :  { %375 = vadd.xlane.f32.xlu1 %v374_v53 }
 0x372   :  { %v349_v54 = vpop.xlane.xlu0 %348 }
 0x373   :  { %v355_v55 = vsub.f32 %v339_v35, %v349_v54  ;;  %v699_v35 = vld [vmem:[#allocation5 + $0x8] sm:$0xff] }
 0x375   :  { %v361_v56 = vmul.f32 1.442695, %v355_v55 }
 0x377   :  { %1222 = vpow2.f32 %v361_v56 }
 0x37d   :  { %v1223_v57 = vpop.eup %1222 }
 0x37e   :  { %v371_v58 = vsel %vm220_vm6, %v1223_v57, 0.0 }
 0x37f   :  { %372 = vadd.xlane.f32.xlu2 %v371_v58 }
 0x383   :  { %411 = vrot.lane.b32.xlu1 %v1520_v1, %s1371_s18 }
 0x385   :  { %v1190_v59 = vpop.permute.xlu0 %1189 }
 0x386   :  { %v1192_v60 = vunpack.i.h.bf16 %v1190_v59  ;;  %v1191_v61 = vunpack.i.l.bf16 %v1190_v59 }
 0x388   :  { %406 = vmatpush.msrb.mxu2 %v1191_v61 }
 0x38a   :  { %484 = vmatpush.msra.mxu2 %v1192_v60 }
 0x38b   :  { %586 = vrot.lane.b32.xlu1 %v1560_v41, %s1367_s0 }
 0x38d   :  { %v1574_v62 = vpop.permute.xlu0 %588 }
 0x38e   :  { %668 = vrot.lane.b32.xlu0 %v1574_v62, %s1366_s1 }
 0x391   :  { %v367_v63 = vpop.xlane.xlu2 %366 }
 0x392   :  { %1224 = vrcp.f32 %v367_v63 }
 0x393   :  { %590 = vrot.lane.b32.xlu1 %v1560_v41, %s1366_s1 }
 0x395   :  { %v1583_v4 = vpop.permute.xlu0 %584 }
 0x397   :  { %437 = vrot.lane.b32.xlu2 %v1525_v5, %s1371_s18 }
 0x398   :  { %v1225_v1 = vpop.eup %1224 }
 0x399   :  { %v381_v2 = vmul.f32 %v1225_v1, %v1217_v42 }
 0x39b   :  { %1141 = vmatmul.msk.f32.vlgmr.msrb.gmra.mxu2 %vm220_vm6, %v381_v2 }
 0x39c   :  { %530 = vmatpush.msrb.mxu2 %v1590_v9 }
 0x39f   :  { %616 = vrot.lane.b32.xlu2 %v1583_v4, %s1366_s1 }
 0x3db   :  { %v370_v5 = vpop.xlane.xlu2 %369 }
 0x3dd   :  { %v376_v6 = vpop.xlane.xlu1 %375 }
 0x3de   :  { %1226 = vrcp.f32 %v376_v6 }
 0x3df   :  { %1228 = vrcp.f32 %v370_v5 }
 0x3e4   :  { %v1227_v7 = vpop.eup %1226 }
 0x3e5   :  { %v384_v8 = vmul.f32 %v1227_v7, %v1221_v52  ;;  %v1229_v11 = vpop.eup %1228 }
 0x3e6   :  { %v382_v15 = vmul.f32 %v1229_v11, %v1219_v50 }
 0x3e7   :  { %1144 = vmatmul.msk.f32.vlgmr.msra.gmra.mxu2 %vm220_vm6, %v384_v8 }
 0x3e8   :  { %577 = vmatpush.msra.mxu2 %v1609_v21 }
 0x3f2   :  { %v373_v13 = vpop.xlane.xlu2 %372 }
 0x3f3   :  { %1230 = vrcp.f32 %v373_v13 }
 0x3f5   :  { %v412_v14 = vpop.permute.xlu1 %411 }
 0x3f6   :  { %432 = vmatpush.msrb.mxu3 %v412_v14 }
 0x3f7   :  { %1142 = vmatmul.msk.f32.vlgmr.msrb.gmra.mxu3 %vm220_vm6, %v382_v15 }
 0x3f8   :  { %507 = vmatpush.msra.mxu3 %v1597_v16 }
 0x3f9   :  { %v1231_v17 = vpop.eup %1230 }
 0x3fa   :  { %v383_v18 = vmul.f32 %v1231_v17, %v1223_v57  ;;  %v438_v19 = vpop.permute.xlu2 %437 }
 0x3fb   :  { %458 = vmatpush.msrb.mxu1 %v438_v19 }
 0x3fc   :  { %1143 = vmatmul.msk.f32.vlgmr.msrb.gmra.mxu1 %vm220_vm6, %v383_v18 }
 0x3fd   :  { %v1602_v20 = vpop.permute.xlu1 %586  ;;  %553 = vmatpush.msra.mxu1 %v1621_v26 }
 0x3fe   :  { %642 = vrot.lane.b32.xlu0 %v1602_v20, %s1366_s1 }
 0x400   :  { %v669_v25 = vpop.permute.xlu0 %668 }
 0x402   :  { %v617_v22 = vpop.permute.xlu2 %616 }
 0x403   :  { %1151 = vmatpush.xpose.msk.msrb.mxu0 %vm220_vm6, %v617_v22 }
 0x405   :  { %v591_v23 = vpop.permute.xlu1 %590 }
 0x406   :  { %1149 = vmatpush.xpose.msk.msrb.mxu3 %vm220_vm6, %v591_v23  ;;  %1152 = vmatmul.msk.f32.vlgmr.msrb.gmra.mxu0 %vm220_vm6, %v1583_v4 }
 0x41e   :  { %v408_v24 = vpop.f32.mrf.mxu2 }
 0x41f   :  { %1146 = vmatmul.msk.f32.vlgmr.msrb.gmra.mxu2 %vm220_vm6, %v408_v24 }
 0x420   :  { %1155 = vmatpush.xpose.msk.msrb.mxu2 %vm220_vm6, %v669_v25 }
 0x46a   :  { %v486_v27 = vpop.f32.mrf.mxu2 }
 0x46b   :  { %1148 = vmatmul.msk.f32.vlgmr.msra.gmra.mxu2 %vm220_vm6, %v486_v27 }
 0x470   :  { %v643_v28 = vpop.permute.xlu0 %642 }
 0x471   :  { %1153 = vmatpush.xpose.msk.msrb.mxu1 %vm220_vm6, %v643_v28 }
 0x473   :  { %1156 = vmatmul.msk.f32.vlgmr.msrb.gmra.mxu2 %vm220_vm6, %v1574_v62 }
 0x479   :  { %v460_v30 = vpop.f32.mrf.mxu1 }
 0x47a   :  { %v434_v31 = vpop.f32.mrf.mxu3  ;;  %1147 = vmatmul.msk.f32.vlgmr.msra.gmra.mxu1 %vm220_vm6, %v460_v30  ;;  %v1193_v30 = vpack.i.bf16 %v1560_v41, %v1574_v62 }
 0x47b   :  { %1145 = vmatmul.msk.f32.vlgmr.msra.gmra.mxu3 %vm220_vm6, %v434_v31 }
 0x482   :  { %1154 = vmatmul.msk.f32.vlgmr.msrb.gmra.mxu1 %vm220_vm6, %v1602_v20 }
 0x483   :  { %1150 = vmatmul.msk.f32.vlgmr.msrb.gmra.mxu3 %vm220_vm6, %v1560_v41  ;;  %v639_v34 = vpop.f32.mrf.mxu0 }
 0x484   :  { %v695_v36 = vmul.f32 0.35355338, %v639_v34  ;;  %v1667_v34 = vld [vmem:[%s1770_s8] ss:$0 sm:$0xff] }
 0x486   :  { %v701_v38 = vadd.f32 %v699_v35, %v695_v36 }
 0x488   :  { %v711_v39 = vsel %vm1635_vm10, -1e+09, %v701_v38 }
 0x489   :  { %v717_v12 = vsel %vm220_vm6, %v711_v39, -inf }
 0x48a   :  { %718 = vmax.xlane.f32.xlu0 %v717_v12 }
 0x4a2   :  { %v532_v40 = vpop.f32.mrf.mxu2 }
 0x4ee   :  { %v579_v42 = vpop.f32.mrf.mxu2 }
 0x4f6   :  { %v691_v43 = vpop.f32.mrf.mxu2 }
 0x4f7   :  { %v697_v44 = vmul.f32 0.35355338, %v691_v43  ;;  %v555_v45 = vpop.f32.mrf.mxu1 }
 0x4f9   :  { %v703_v46 = vadd.f32 %v699_v35, %v697_v44 }
 0x4fb   :  { %v713_v47 = vsel %vm1635_vm10, -1e+09, %v703_v46 }
 0x4fc   :  { %v723_v48 = vsel %vm220_vm6, %v713_v47, -inf }
 0x4fd   :  { %724 = vmax.xlane.f32.xlu1 %v723_v48  ;;  %v719_v49 = vpop.xlane.xlu0 %718 }
 0x4fe   :  { %v509_v50 = vpop.f32.mrf.mxu3  ;;  %v727_v51 = vsub.f32 %v711_v39, %v719_v49 }
 0x4ff   :  { %v533_v52 = vadd.f32 %v532_v40, %v509_v50  ;;  %v665_v53 = vpop.f32.mrf.mxu1 }
 0x500   :  { %v732_v54 = vmul.f32 1.442695, %v727_v51  ;;  %v696_v55 = vmul.f32 0.35355338, %v665_v53  ;;  %v1028_v53 = vld [vmem:[%s1773_s11 + $0x10] sm:$0xff] }
 0x501   :  { %v558_v56 = vadd.f32 %v555_v45, %v533_v52 }
 0x502   :  { %v702_v57 = vadd.f32 %v699_v35, %v696_v55  ;;  %1232 = vpow2.f32 %v732_v54  ;;  %v1027_v54 = vld [vmem:[%s1773_s11 + $0x8] sm:$0xff]  ;;  %v1026_v55 = vld [vmem:[%s1773_s11] sm:$0xff] }
 0x503   :  { %v582_v58 = vadd.f32 %v579_v42, %v558_v56 }
 0x504   :  { %v712_v59 = vsel %vm1635_vm10, -1e+09, %v702_v57 }
 0x505   :  { %v720_v60 = vsel %vm220_vm6, %v712_v59, -inf  ;;  %v960_v41 = vadd.f32 %v1667_v34, %v582_v58 }
 0x506   :  { %v613_v61 = vpop.f32.mrf.mxu3  ;;  %721 = vmax.xlane.f32.xlu1 %v720_v60 }
 0x507   :  { %v694_v63 = vmul.f32 0.35355338, %v613_v61  ;;  %v1671_v62 = vadd.f32 %v960_v41, %v1468_v0 }
 0x508   :  { %v1233_v2 = vpop.eup %1232 }
 0x509   :  { %v700_v1 = vadd.f32 %v699_v35, %v694_v63  ;;  %v741_v8 = vsel %vm220_vm6, %v1233_v2, 0.0  ;;  %v966_v35 = vsel %vm102_vm0, %v1671_v62, 0.0 }
 0x50b   :  { %v710_v6 = vsel %vm1635_vm10, -1e+09, %v700_v1 }
 0x50c   :  { %v714_v7 = vsel %vm220_vm6, %v710_v6, -inf }
 0x50d   :  { %715 = vmax.xlane.f32.xlu2 %v714_v7 }
 0x50e   :  { %742 = vadd.xlane.f32.xlu1 %v741_v8 }
 0x527   :  { %784 = vrot.lane.b32.xlu1 %v1583_v4, %s1371_s18 }
 0x570   :  { %v725_v5 = vpop.xlane.xlu1 %724 }
 0x571   :  { %v729_v11 = vsub.f32 %v713_v47, %v725_v5 }
 0x573   :  { %v736_v13 = vmul.f32 1.442695, %v729_v11  ;;  %v1703_v11 = vld [vmem:[%s1771_s9] ss:$0 sm:$0xff] }
 0x575   :  { %1234 = vpow2.f32 %v736_v13 }
 0x579   :  { %v722_v14 = vpop.xlane.xlu1 %721 }
 0x57a   :  { %v728_v15 = vsub.f32 %v712_v59, %v722_v14  ;;  %v1709_v14 = vld [vmem:[%s1772_s10] ss:$0 sm:$0xff] }
 0x57b   :  { %v1235_v17 = vpop.eup %1234 }
 0x57c   :  { %v734_v18 = vmul.f32 1.442695, %v728_v15  ;;  %v747_v19 = vsel %vm220_vm6, %v1235_v17, 0.0 }
 0x57d   :  { %748 = vadd.xlane.f32.xlu2 %v747_v19  ;;  %v1072_v19 = vld [vmem:[%s1775_s13 + $0x38] sm:$0xff] }
 0x57e   :  { %1236 = vpow2.f32 %v734_v18 }
 0x580   :  { %v716_v22 = vpop.xlane.xlu2 %715 }
 0x581   :  { %v726_v23 = vsub.f32 %v710_v6, %v716_v22  ;;  %v743_v28 = vpop.xlane.xlu1 %742  ;;  %v1071_v22 = vld [vmem:[%s1775_s13 + $0x30] sm:$0xff] }
 0x583   :  { %v730_v24 = vmul.f32 1.442695, %v726_v23  ;;  %v1070_v23 = vld [vmem:[%s1775_s13 + $0x28] sm:$0xff] }
 0x584   :  { %v1237_v25 = vpop.eup %1236 }
 0x585   :  { %1238 = vpow2.f32 %v730_v24  ;;  %v744_v27 = vsel %vm220_vm6, %v1237_v25, 0.0  ;;  %v1069_v24 = vld [vmem:[%s1775_s13 + $0x20] sm:$0xff] }
 0x586   :  { %745 = vadd.xlane.f32.xlu0 %v744_v27  ;;  %1240 = vrcp.f32 %v743_v28 }
 0x58b   :  { %v1239_v4 = vpop.eup %1238 }
 0x58c   :  { %v738_v29 = vsel %vm220_vm6, %v1239_v4, 0.0  ;;  %v1241_v31 = vpop.eup %1240 }
 0x58d   :  { %v755_v32 = vmul.f32 %v1241_v31, %v1233_v2 }
 0x58e   :  { %739 = vadd.xlane.f32.xlu0 %v738_v29 }
 0x595   :  { %1194 = vrot.lane.b32.xlu2 %v1193_v30, %s1371_s18 }
 0x599   :  { %v785_v33 = vpop.permute.xlu1 %784 }
 0x59a   :  { %805 = vmatpush.msra.mxu0 %v785_v33 }
 0x59b   :  { %1158 = vmatmul.msk.f32.vlgmr.msra.gmra.mxu0 %vm220_vm6, %v755_v32 }
 0x59c   :  { %903 = vmatpush.msrb.mxu0 %v1590_v9 }
 0x59e   :  { %1092 = vmatpush.msra.mxu0 %v1072_v19 }
 0x5a0   :  { %1093 = vmatpush.msra.mxu0 %v1071_v22 }
 0x5a2   :  { %810 = vrot.lane.b32.xlu0 %v1602_v20, %s1371_s18  ;;  %1094 = vmatpush.msra.mxu0 %v1070_v23 }
 0x5a4   :  { %1095 = vmatpush.msra.mxu0 %v1069_v24 }
 0x5be   :  { %967 = vadd.xlane.f32.xlu2 %v966_v35 }
 0x5f0   :  { %v749_v36 = vpop.xlane.xlu2 %748 }
 0x5f1   :  { %1242 = vrcp.f32 %v749_v36  ;;  %v1067_v36 = vld [vmem:[%s1775_s13 + $0x10] sm:$0xff] }
 0x5f7   :  { %v1243_v9 = vpop.eup %1242 }
 0x5f8   :  { %v1195_v37 = vpop.permute.xlu2 %1194  ;;  %v757_v12 = vmul.f32 %v1243_v9, %v1235_v17  ;;  %v1066_v9 = vld [vmem:[%s1775_s13 + $0x8] sm:$0xff] }
 0x5f9   :  { %v1197_v38 = vunpack.i.h.bf16 %v1195_v37  ;;  %v1196_v20 = vunpack.i.l.bf16 %v1195_v37  ;;  %v746_v39 = vpop.xlane.xlu0 %745  ;;  %v1065_v37 = vld [vmem:[%s1775_s13] sm:$0xff] }
 0x5fb   :  { %779 = vmatpush.msra.mxu3 %v1197_v38  ;;  %857 = vmatpush.msra.mxu2 %v1196_v20 }
 0x5fc   :  { %1160 = vmatmul.msk.f32.vlgmr.msra.gmra.mxu2 %vm220_vm6, %v757_v12 }
 0x5fd   :  { %880 = vmatpush.msrb.mxu3 %v1597_v16  ;;  %950 = vmatpush.msrb.mxu2 %v1609_v21 }
 0x601   :  { %v740_v0 = vpop.xlane.xlu0 %739 }
 0x602   :  { %1244 = vrcp.f32 %v740_v0 }
 0x603   :  { %1246 = vrcp.f32 %v746_v39 }
 0x608   :  { %v1245_v40 = vpop.eup %1244 }
 0x609   :  { %v754_v42 = vmul.f32 %v1245_v40, %v1239_v4  ;;  %v1247_v43 = vpop.eup %1246 }
 0x60a   :  { %v756_v44 = vmul.f32 %v1247_v43, %v1237_v25  ;;  %v1068_v25 = vld [vmem:[%s1775_s13 + $0x18] sm:$0xff]  ;;  %v1205_v43 = vld [vmem:[%s1776_s14] ss:$0 sm:$0xff] }
 0x60b   :  { %1157 = vmatmul.msk.f32.vlgmr.msra.gmra.mxu3 %vm220_vm6, %v754_v42  ;;  %1096 = vmatpush.msra.mxu0 %v1068_v25 }
 0x60d   :  { %1097 = vmatpush.msra.mxu0 %v1067_v36 }
 0x60f   :  { %1098 = vmatpush.msra.mxu0 %v1066_v9 }
 0x611   :  { %1099 = vmatpush.msra.mxu0 %v1065_v37 }
 0x614   :  { %v811_v45 = vpop.permute.xlu0 %810 }
 0x615   :  { %831 = vmatpush.msra.mxu1 %v811_v45 }
 0x616   :  { %1159 = vmatmul.msk.f32.vlgmr.msra.gmra.mxu1 %vm220_vm6, %v756_v44 }
 0x617   :  { %926 = vmatpush.msrb.mxu1 %v1621_v26  ;;  %v1029_v26 = vld [vmem:[%s1773_s11 + $0x18] sm:$0xff]  ;;  %s1117_s11 = sshll.u32 %s1777_s15, 4  ;;  %s1118_s11 = int_to_ptr.hbm [resolvable:$true] %s1117_s11 }
 0x618   :  { %v807_v46 = vpop.f32.mrf.mxu0  ;;  %1052 = vmatpush.msra.mxu3 %v1029_v26 }
 0x619   :  { %1161 = vmatmul.msk.f32.vlgmr.msrb.gmra.mxu3 %vm220_vm6, %v807_v46 }
 0x61a   :  { %1053 = vmatpush.msra.mxu3 %v1028_v53 }
 0x61c   :  { %1054 = vmatpush.msra.mxu3 %v1027_v54 }
 0x61e   :  { %1055 = vmatpush.msra.mxu3 %v1026_v55 }
 0x631   :  { %v968_v16 = vpop.xlane.xlu2 %967 }
 0x632   :  { %v972_v21 = vmul.f32 %v968_v16, %v1476_v10 }
 0x634   :  { %v974_v47 = vsub.f32 %v1671_v62, %v972_v21 }
 0x636   :  { %v976_v48 = vmul.f32 %v974_v47, %v974_v47  ;;  %v1017_v13 = vmul.f32 %v1703_v11, %v974_v47 }
 0x638   :  { %v978_v49 = vsel %vm102_vm0, %v976_v48, 0.0 }
 0x639   :  { %979 = vadd.xlane.f32.xlu0 %v978_v49 }
 0x67f   :  { %v859_v50 = vpop.f32.mrf.mxu2 }
 0x680   :  { %1164 = vmatmul.msk.f32.vlgmr.msrb.gmra.mxu2 %vm220_vm6, %v859_v50 }
 0x68e   :  { %v781_v51 = vpop.f32.mrf.mxu3 }
 0x68f   :  { %1162 = vmatmul.msk.f32.vlgmr.msrb.gmra.mxu0 %vm220_vm6, %v781_v51 }
 0x693   :  { %v833_v52 = vpop.f32.mrf.mxu1 }
 0x694   :  { %1163 = vmatmul.msk.f32.vlgmr.msrb.gmra.mxu1 %vm220_vm6, %v833_v52 }
 0x69c   :  { %v882_v4 = vpop.f32.mrf.mxu3 }
 0x6ac   :  { %v980_v56 = vpop.xlane.xlu0 %979 }
 0x6ad   :  { %v984_v57 = vmul.f32 0.032258064, %v980_v56 }
 0x6af   :  { %1248 = vrsqrt.f32 %v984_v57  ;;  %vm993_vm11 = vcmp.eq.f32.partialorder %v984_v57, inf  ;;  %v996_v6 = vand.u32 2147483648, %v984_v57  ;;  %vm995_vm12 = vcmp.eq.f32.partialorder %v984_v57, 0.0 }
 0x6b5   :  { %v1249_v58 = vpop.eup %1248 }
 0x6b6   :  { %v987_v59 = vmul.f32 %v1249_v58, %v984_v57 }
 0x6b8   :  { %v988_v60 = vmul.f32 %v1249_v58, %v987_v59 }
 0x6ba   :  { %v989_v61 = vmul.f32 0.5, %v988_v60 }
 0x6bc   :  { %v990_v63 = vsub.f32 1.5, %v989_v61 }
 0x6be   :  { %v991_v1 = vmul.f32 %v1249_v58, %v990_v63 }
 0x6c0   :  { %v992_v2 = vmul.f32 %v991_v1, %v984_v57 }
 0x6c2   :  { %v994_v7 = vsel %vm993_vm11, %v984_v57, %v992_v2 }
 0x6c3   :  { %v997_v8 = vsel %vm995_vm12, %v996_v6, %v994_v7 }
 0x6c4   :  { %v1010_v5 = vadd.f32 1e-06, %v997_v8 }
 0x6c6   :  { %1250 = vrcp.f32 %v1010_v5 }
 0x6cc   :  { %v1251_v15 = vpop.eup %1250 }
 0x6cd   :  { %v1019_v17 = vmul.f32 %v1251_v15, %v1017_v13 }
 0x6cf   :  { %v1024_v18 = vadd.f32 %v1709_v14, %v1019_v17 }
 0x6d1   :  { %1165 = vmatmul.msk.f32.vlgmr.msra.gmra.mxu3 %vm102_vm0, %v1024_v18 }
 0x703   :  { %v952_v31 = vpop.f32.mrf.mxu2 }
 0x70c   :  { %v905_v27 = vpop.f32.mrf.mxu0 }
 0x70d   :  { %v906_v28 = vadd.f32 %v905_v27, %v882_v4 }
 0x711   :  { %v928_v29 = vpop.f32.mrf.mxu1 }
 0x712   :  { %v931_v30 = vadd.f32 %v928_v29, %v906_v28 }
 0x714   :  { %v955_v32 = vadd.f32 %v952_v31, %v931_v30 }
 0x716   :  { %v961_v33 = vadd.f32 %v1667_v34, %v955_v32 }
 0x718   :  { %v963_v41 = vadd.f32 %v961_v33, %v1472_v3  ;;  %v1204_v3 = vld [vmem:[%s1774_s12] ss:$0 sm:$0xff]  ;;  %s1372_s12 = smov [#allocation8]  }
 0x719   :  { %s1115_s14 = sshll.u32 %s1372_s12, 4  ;;  %s1116_s14 = int_to_ptr.vmem [resolvable:$true] %s1115_s14 }
 0x71a   :  { %v969_v35 = vsel %vm102_vm0, %v963_v41, 0.0 }
 0x71b   :  { %970 = vadd.xlane.f32.xlu1 %v969_v35 }
 0x754   :  { %v1057_v34 = vpop.f32.mrf.mxu3 }
 0x755   :  { %v1058_v38 = vadd.f32 %v1204_v3, %v1057_v34 }
 0x757   :  { %v1063_v20 = vmax.f32 %v1058_v38, 0.0 }
 0x759   :  { %1167 = vmatmul.msk.f32.vlgmr.msra.gmra.mxu0 %vm1077_vm13, %v1063_v20 }
 0x78e   :  { %v971_v39 = vpop.xlane.xlu1 %970 }
 0x78f   :  { %v973_v12 = vmul.f32 %v971_v39, %v1476_v10 }
 0x791   :  { %v975_v0 = vsub.f32 %v963_v41, %v973_v12 }
 0x793   :  { %v977_v40 = vmul.f32 %v975_v0, %v975_v0 }
 0x795   :  { %v981_v42 = vsel %vm102_vm0, %v977_v40, 0.0 }
 0x796   :  { %982 = vadd.xlane.f32.xlu2 %v981_v42 }
 0x7d6   :  { %v1101_v44 = vpop.f32.mrf.mxu0 }
 0x7d7   :  { %v1102_v45 = vadd.f32 %v1205_v43, %v1101_v44 }
 0x7d9   :  { %v1107_v46 = vadd.f32 %v1102_v45, %v1671_v62  ;;  %v1018_v62 = vmul.f32 %v1703_v11, %v975_v0 }
 0x7db   :  { %1109 = vst.msk [vmem:[#allocation8] sm:$0xff] %vm102_vm0, %v1107_v46 }
 0x809   :  { %v983_v16 = vpop.xlane.xlu2 %982 }
 0x80a   :  { %v985_v21 = vmul.f32 0.032258064, %v983_v16 }
 0x80c   :  { %1252 = vrsqrt.f32 %v985_v21  ;;  %vm1005_vm14 = vcmp.eq.f32.partialorder %v985_v21, inf  ;;  %v1008_v26 = vand.u32 2147483648, %v985_v21  ;;  %vm1007_vm15 = vcmp.eq.f32.partialorder %v985_v21, 0.0 }
 0x812   :  { %v1253_v47 = vpop.eup %1252 }
 0x813   :  { %v999_v10 = vmul.f32 %v1253_v47, %v985_v21 }
 0x815   :  { %v1000_v48 = vmul.f32 %v1253_v47, %v999_v10 }
 0x817   :  { %v1001_v49 = vmul.f32 0.5, %v1000_v48 }
 0x819   :  { %v1002_v50 = vsub.f32 1.5, %v1001_v49 }
 0x81b   :  { %v1003_v51 = vmul.f32 %v1253_v47, %v1002_v50 }
 0x81d   :  { %v1004_v52 = vmul.f32 %v1003_v51, %v985_v21 }
 0x81f   :  { %v1006_v53 = vsel %vm1005_vm14, %v985_v21, %v1004_v52 }
 0x820   :  { %v1009_v54 = vsel %vm1007_vm15, %v1008_v26, %v1006_v53 }
 0x821   :  { %v1011_v55 = vadd.f32 1e-06, %v1009_v54 }
 0x823   :  { %1254 = vrcp.f32 %v1011_v55 }
 0x829   :  { %v1255_v56 = vpop.eup %1254 }
 0x82a   :  { %v1020_v57 = vmul.f32 %v1255_v56, %v1018_v62 }
 0x82c   :  { %v1025_v58 = vadd.f32 %v1709_v14, %v1020_v57 }
 0x82e   :  { %1166 = vmatmul.msk.f32.gmra.mxu3 %vm102_vm0, %v1025_v58 }
 0x8b1   :  { %v1060_v59 = vpop.f32.mrf.mxu3 }
 0x8b2   :  { %v1061_v60 = vadd.f32 %v1204_v3, %v1060_v59 }
 0x8b4   :  { %v1064_v61 = vmax.f32 %v1061_v60, 0.0 }
 0x8b6   :  { %1168 = vmatmul.msk.f32.gmra.mxu0 %vm1077_vm13, %v1064_v61 }
 0x933   :  { %v1104_v63 = vpop.f32.mrf.mxu0 }
 0x934   :  { %v1105_v1 = vadd.f32 %v1205_v43, %v1104_v63 }
 0x936   :  { %v1108_v2 = vadd.f32 %v1105_v1, %v963_v41 }
 0x938   :  { %1110 = vst.msk [vmem:[#allocation8 + $0x8] sm:$0xff] %vm102_vm0, %v1108_v2 }
 0x939   :  { %1123 = dma.vmem_to_hbm [thread:$0]  %s1116_s14, 256, %s1118_s11, [#allocation4], %s1359_s26, %s1359_s26, %s1360_s27  }
 0x93a   :  { %1356 = dma.done.wait [#allocation4], 256  }
 0x93b   :  { %1357 = vsyncadd [#allocation4], 4294967040 }
 0x93c   :  { %1128 = vsyncpa [#allocation3], 1 }
 0x93d   :  { %1129 = vsyncpa [#allocation6], 1 }
 0x93e   :  { %1130 = vsyncpa [#allocation4], 1 }

</bundles_post_ra>
